<compile_context>
chip_gen: v7x
topology: tpu7x:2x2x1
jax: 0.10.0
libtpu: 0.0.40
codegen_flags: <defaults>
</compile_context>

<pallas_src>
import jax
import jax.numpy as jnp
import numpy as np
from jax.experimental import pallas as pl
from jax.experimental.pallas import tpu as pltpu

BN_EPS = 1e-5
LANE = 128  # pad hidden / output feature dims to this


def _mlp_bn_kernel(x_ref, w1_ref, w2_ref, w3_ref, vec_ref, o_ref):
    # vec slab rows: 0=gamma1, 1=beta1, 2=gamma2, 3=beta2, 4=b3 (rows 5..7 zero pad)
    g1 = vec_ref[0:1, :]
    be1 = vec_ref[1:2, :]
    g2 = vec_ref[2:3, :]
    be2 = vec_ref[3:4, :]
    b3 = vec_ref[4:5, :]

    x = x_ref[...]
    inv_b = 1.0 / x.shape[0]  # static batch size

    # --- fc1 (bias dropped: cancelled exactly by batch-stats BN) + bn1 + relu ---
    h = jnp.dot(x, w1_ref[...], preferred_element_type=jnp.float32)
    mu = jnp.sum(h, axis=0, keepdims=True) * inv_b
    ex2 = jnp.sum(h * h, axis=0, keepdims=True) * inv_b
    var = jnp.maximum(ex2 - mu * mu, 0.0)          # one-pass biased variance
    scale = g1 * jax.lax.rsqrt(var + BN_EPS)       # rsqrt -> EUP slot
    shift = be1 - mu * scale
    h = jnp.maximum(h * scale + shift, 0.0)

    # --- fc2 (bias dropped) + bn2 + relu ---
    h = jnp.dot(h, w2_ref[...], preferred_element_type=jnp.float32)
    mu = jnp.sum(h, axis=0, keepdims=True) * inv_b
    ex2 = jnp.sum(h * h, axis=0, keepdims=True) * inv_b
    var = jnp.maximum(ex2 - mu * mu, 0.0)
    scale = g2 * jax.lax.rsqrt(var + BN_EPS)
    shift = be2 - mu * scale
    h = jnp.maximum(h * scale + shift, 0.0)

    # --- fc3 (lane-dense 128-wide output; pad columns are exact zeros) ---
    o_ref[...] = (jnp.dot(h, w3_ref[...], preferred_element_type=jnp.float32)
                  + b3).astype(o_ref.dtype)


def prepare_params(params, input_size, hidden, n_class):
    """Zero-pad weights to lane-aligned shapes and stack per-feature vectors.

    fc1/fc2 biases are intentionally NOT packed: batch-stats BatchNorm cancels
    them exactly, so the kernel never needs them.
    """
    hp = LANE   # padded hidden
    cp = LANE   # padded n_class (lane-dense output)

    def pad2(w, r, c):
        out = jnp.zeros((r, c), jnp.float32)
        return out.at[: w.shape[0], : w.shape[1]].set(w)

    def padv(v, n):
        out = jnp.zeros((n,), jnp.float32)
        return out.at[: v.shape[-1]].set(v.reshape(-1))

    w1p = pad2(params["w1"], input_size, hp)
    w2p = pad2(params["w2"], hp, hp)
    w3p = pad2(params["w3"], hp, cp)

    # (8, 128) slab: rows = g1, be1, g2, be2, b3, <3 unused zero rows>
    zero = jnp.zeros((LANE,), jnp.float32)
    vec = jnp.stack([
        padv(params["g1"], hp), padv(params["be1"], hp),
        padv(params["g2"], hp), padv(params["be2"], hp),
        padv(params["b3"], cp), zero, zero, zero,
    ], axis=0)
    return {"w1": w1p, "w2": w2p, "w3": w3p, "vec": vec,
            "n_class": n_class, "input_size": input_size}


def _vmem_limit_bytes(batch, input_size):
    """Conservative explicit scoped-VMEM budget (helps v5e's 16 MiB default,
    stays under v7x's 64 MiB physical)."""
    weights = (input_size * LANE + 2 * LANE * LANE + 8 * LANE) * 4
    acts = (batch * input_size + 4 * batch * LANE) * 4
    est = 2 * (weights + acts) + (2 << 20)     # 2x for runtime double-buffering + headroom
    return int(min(max(est, 8 << 20), 32 << 20))


def data_classifier_digits(x, prepared, return_padded=False):
    """x: (B, input_size) float32. prepared: output of prepare_params.

    return_padded=True returns the lane-dense (B, 128) output (pad lanes are
    exact zeros) so downstream ops can avoid a non-lane-dense re-slice.
    """
    B = x.shape[0]
    n_class = prepared["n_class"]
    args = (x, prepared["w1"], prepared["w2"], prepared["w3"], prepared["vec"])
    vmem_spec = pl.BlockSpec(memory_space=pltpu.MemorySpace.VMEM)
    out_padded = pl.pallas_call(
        _mlp_bn_kernel,
        out_shape=jax.ShapeDtypeStruct((B, LANE), jnp.float32),
        in_specs=[vmem_spec] * len(args),
        out_specs=vmem_spec,
        compiler_params=pltpu.CompilerParams(
            vmem_limit_bytes=_vmem_limit_bytes(B, prepared["input_size"])),
    )(*args)
    if return_padded:
        return out_padded
    return out_padded[:, :n_class]


def init_params(key, input_size=128, hidden=100, n_class=10):
    """Deterministic init mimicking PyTorch defaults (uniform(-1/sqrt(fan_in), ...))."""
    ks = jax.random.split(key, 6)

    def linear(kw, kb, fan_in, fan_out):
        bound = 1.0 / np.sqrt(fan_in)
        w = jax.random.uniform(kw, (fan_in, fan_out), jnp.float32, -bound, bound)
        b = jax.random.uniform(kb, (1, fan_out), jnp.float32, -bound, bound)
        return w, b

    w1, b1 = linear(ks[0], ks[1], input_size, hidden)
    w2, b2 = linear(ks[2], ks[3], hidden, hidden)
    w3, b3 = linear(ks[4], ks[5], hidden, n_class)
    return {
        "w1": w1, "b1": b1,
        "g1": jnp.ones((1, hidden), jnp.float32), "be1": jnp.zeros((1, hidden), jnp.float32),
        "w2": w2, "b2": b2,
        "g2": jnp.ones((1, hidden), jnp.float32), "be2": jnp.zeros((1, hidden), jnp.float32),
        "w3": w3, "b3": b3,
    }


def _reference(x, p):
    """Pure-JAX reference on the ORIGINAL (unpadded) params, biases included,
    matching a freshly constructed PyTorch module in training mode."""
    def bn(h, g, be):
        mu = jnp.mean(h, axis=0, keepdims=True)
        var = jnp.mean((h - mu) ** 2, axis=0, keepdims=True)
        return (h - mu) * jax.lax.rsqrt(var + BN_EPS) * g + be

    h = jnp.maximum(bn(x @ p["w1"] + p["b1"], p["g1"], p["be1"]), 0.0)
    h = jnp.maximum(bn(h @ p["w2"] + p["b2"], p["g2"], p["be2"]), 0.0)
    return h @ p["w3"] + p["b3"]


if __name__ == "__main__":
    key = jax.random.PRNGKey(0)
    k_param, k_x = jax.random.split(key)

    B, INPUT_SIZE, HIDDEN, N_CLASS = 8, 128, 100, 10
    params = init_params(k_param, input_size=INPUT_SIZE, hidden=HIDDEN, n_class=N_CLASS)
    prepared = prepare_params(params, INPUT_SIZE, HIDDEN, N_CLASS)
    x = jax.random.normal(k_x, (B, INPUT_SIZE), jnp.float32)

    out = data_classifier_digits(x, prepared)
    out = jax.block_until_ready(out)

    ref = jax.block_until_ready(_reference(x, params))
    assert out.shape == (B, N_CLASS)
    np.testing.assert_allclose(np.asarray(out), np.asarray(ref), rtol=1e-5, atol=1e-5)

    # Pad lanes of the lane-dense output must be exact zeros.
    out_pad = jax.block_until_ready(data_classifier_digits(x, prepared, return_padded=True))
    np.testing.assert_array_equal(np.asarray(out_pad[:, N_CLASS:]), 0.0)

    print("KERNEL_OK")
</pallas_src>

<mosaic_0001>
module attributes {stable_mosaic.version = 11 : i64} {
  func.func @_mlp_bn_kernel(%arg0: memref<8x128xf32, #tpu.memory_space<vmem>>, %arg1: memref<128x128xf32, #tpu.memory_space<vmem>>, %arg2: memref<128x128xf32, #tpu.memory_space<vmem>>, %arg3: memref<128x128xf32, #tpu.memory_space<vmem>>, %arg4: memref<8x128xf32, #tpu.memory_space<vmem>>, %arg5: memref<8x128xf32, #tpu.memory_space<vmem>>) attributes {dimension_semantics = [], scalar_prefetch = 0 : i64, scratch_operands = 0 : i64, tpu.core_type = #tpu.core_type<tc>} {
    %c0 = arith.constant 0 : index
    %c0_0 = arith.constant 0 : index
    %0 = vector.load %arg4[%c0, %c0_0] : memref<8x128xf32, #tpu.memory_space<vmem>>, vector<1x128xf32>
    %c1 = arith.constant 1 : index
    %c0_1 = arith.constant 0 : index
    %1 = vector.load %arg4[%c1, %c0_1] : memref<8x128xf32, #tpu.memory_space<vmem>>, vector<1x128xf32>
    %c2 = arith.constant 2 : index
    %c0_2 = arith.constant 0 : index
    %2 = vector.load %arg4[%c2, %c0_2] : memref<8x128xf32, #tpu.memory_space<vmem>>, vector<1x128xf32>
    %c3 = arith.constant 3 : index
    %c0_3 = arith.constant 0 : index
    %3 = vector.load %arg4[%c3, %c0_3] : memref<8x128xf32, #tpu.memory_space<vmem>>, vector<1x128xf32>
    %c4 = arith.constant 4 : index
    %c0_4 = arith.constant 0 : index
    %4 = vector.load %arg4[%c4, %c0_4] : memref<8x128xf32, #tpu.memory_space<vmem>>, vector<1x128xf32>
    %c0_5 = arith.constant 0 : index
    %c0_6 = arith.constant 0 : index
    %5 = vector.load %arg0[%c0_5, %c0_6] : memref<8x128xf32, #tpu.memory_space<vmem>>, vector<8x128xf32>
    %c0_7 = arith.constant 0 : index
    %c0_8 = arith.constant 0 : index
    %6 = vector.load %arg1[%c0_7, %c0_8] : memref<128x128xf32, #tpu.memory_space<vmem>>, vector<128x128xf32>
    %cst = arith.constant dense<0.000000e+00> : vector<8x128xf32>
    %7 = tpu.matmul %5, %6, %cst {dimension_numbers = #tpu.dot_dimension_numbers<[1], [0], [0], [1], [0, 0, 1, 1], [], []>} : vector<8x128xf32>, vector<128x128xf32>, vector<8x128xf32> -> vector<8x128xf32>
    %cst_9 = arith.constant dense<0.000000e+00> : vector<128xf32>
    %8 = vector.multi_reduction <add>, %7, %cst_9 [0] : vector<8x128xf32> to vector<128xf32>
    %9 = vector.shape_cast %8 : vector<128xf32> to vector<1x128xf32>
    %cst_10 = arith.constant 1.250000e-01 : f32
    %10 = vector.broadcast %cst_10 : f32 to vector<1x128xf32>
    %11 = arith.mulf %9, %10 : vector<1x128xf32>
    %12 = arith.mulf %7, %7 : vector<8x128xf32>
    %cst_11 = arith.constant dense<0.000000e+00> : vector<128xf32>
    %13 = vector.multi_reduction <add>, %12, %cst_11 [0] : vector<8x128xf32> to vector<128xf32>
    %14 = vector.shape_cast %13 : vector<128xf32> to vector<1x128xf32>
    %cst_12 = arith.constant 1.250000e-01 : f32
    %15 = vector.broadcast %cst_12 : f32 to vector<1x128xf32>
    %16 = arith.mulf %14, %15 : vector<1x128xf32>
    %17 = arith.mulf %11, %11 : vector<1x128xf32>
    %18 = arith.subf %16, %17 : vector<1x128xf32>
    %cst_13 = arith.constant 0.000000e+00 : f32
    %19 = vector.broadcast %cst_13 : f32 to vector<1x128xf32>
    %20 = arith.maximumf %18, %19 : vector<1x128xf32>
    %cst_14 = arith.constant 9.99999974E-6 : f32
    %21 = vector.broadcast %cst_14 : f32 to vector<1x128xf32>
    %22 = arith.addf %20, %21 : vector<1x128xf32>
    %23 = math.rsqrt %22 : vector<1x128xf32>
    %24 = arith.mulf %0, %23 : vector<1x128xf32>
    %25 = arith.mulf %11, %24 : vector<1x128xf32>
    %26 = arith.subf %1, %25 : vector<1x128xf32>
    %27 = vector.broadcast %24 : vector<1x128xf32> to vector<8x128xf32>
    %28 = arith.mulf %7, %27 : vector<8x128xf32>
    %29 = vector.broadcast %26 : vector<1x128xf32> to vector<8x128xf32>
    %30 = arith.addf %28, %29 : vector<8x128xf32>
    %cst_15 = arith.constant 0.000000e+00 : f32
    %31 = vector.broadcast %cst_15 : f32 to vector<8x128xf32>
    %32 = arith.maximumf %30, %31 : vector<8x128xf32>
    %c0_16 = arith.constant 0 : index
    %c0_17 = arith.constant 0 : index
    %33 = vector.load %arg2[%c0_16, %c0_17] : memref<128x128xf32, #tpu.memory_space<vmem>>, vector<128x128xf32>
    %cst_18 = arith.constant dense<0.000000e+00> : vector<8x128xf32>
    %34 = tpu.matmul %32, %33, %cst_18 {dimension_numbers = #tpu.dot_dimension_numbers<[1], [0], [0], [1], [0, 0, 1, 1], [], []>} : vector<8x128xf32>, vector<128x128xf32>, vector<8x128xf32> -> vector<8x128xf32>
    %cst_19 = arith.constant dense<0.000000e+00> : vector<128xf32>
    %35 = vector.multi_reduction <add>, %34, %cst_19 [0] : vector<8x128xf32> to vector<128xf32>
    %36 = vector.shape_cast %35 : vector<128xf32> to vector<1x128xf32>
    %cst_20 = arith.constant 1.250000e-01 : f32
    %37 = vector.broadcast %cst_20 : f32 to vector<1x128xf32>
    %38 = arith.mulf %36, %37 : vector<1x128xf32>
    %39 = arith.mulf %34, %34 : vector<8x128xf32>
    %cst_21 = arith.constant dense<0.000000e+00> : vector<128xf32>
    %40 = vector.multi_reduction <add>, %39, %cst_21 [0] : vector<8x128xf32> to vector<128xf32>
    %41 = vector.shape_cast %40 : vector<128xf32> to vector<1x128xf32>
    %cst_22 = arith.constant 1.250000e-01 : f32
    %42 = vector.broadcast %cst_22 : f32 to vector<1x128xf32>
    %43 = arith.mulf %41, %42 : vector<1x128xf32>
    %44 = arith.mulf %38, %38 : vector<1x128xf32>
    %45 = arith.subf %43, %44 : vector<1x128xf32>
    %cst_23 = arith.constant 0.000000e+00 : f32
    %46 = vector.broadcast %cst_23 : f32 to vector<1x128xf32>
    %47 = arith.maximumf %45, %46 : vector<1x128xf32>
    %cst_24 = arith.constant 9.99999974E-6 : f32
    %48 = vector.broadcast %cst_24 : f32 to vector<1x128xf32>
    %49 = arith.addf %47, %48 : vector<1x128xf32>
    %50 = math.rsqrt %49 : vector<1x128xf32>
    %51 = arith.mulf %2, %50 : vector<1x128xf32>
    %52 = arith.mulf %38, %51 : vector<1x128xf32>
    %53 = arith.subf %3, %52 : vector<1x128xf32>
    %54 = vector.broadcast %51 : vector<1x128xf32> to vector<8x128xf32>
    %55 = arith.mulf %34, %54 : vector<8x128xf32>
    %56 = vector.broadcast %53 : vector<1x128xf32> to vector<8x128xf32>
    %57 = arith.addf %55, %56 : vector<8x128xf32>
    %cst_25 = arith.constant 0.000000e+00 : f32
    %58 = vector.broadcast %cst_25 : f32 to vector<8x128xf32>
    %59 = arith.maximumf %57, %58 : vector<8x128xf32>
    %c0_26 = arith.constant 0 : index
    %c0_27 = arith.constant 0 : index
    %60 = vector.load %arg3[%c0_26, %c0_27] : memref<128x128xf32, #tpu.memory_space<vmem>>, vector<128x128xf32>
    %cst_28 = arith.constant dense<0.000000e+00> : vector<8x128xf32>
    %61 = tpu.matmul %59, %60, %cst_28 {dimension_numbers = #tpu.dot_dimension_numbers<[1], [0], [0], [1], [0, 0, 1, 1], [], []>} : vector<8x128xf32>, vector<128x128xf32>, vector<8x128xf32> -> vector<8x128xf32>
    %62 = vector.broadcast %4 : vector<1x128xf32> to vector<8x128xf32>
    %63 = arith.addf %61, %62 : vector<8x128xf32>
    %c0_29 = arith.constant 0 : index
    %c0_30 = arith.constant 0 : index
    %64 = vector.load %arg5[%c0_29, %c0_30] : memref<8x128xf32, #tpu.memory_space<vmem>>, vector<8x128xf32>
    tpu.vector_store %arg5[%c0_29, %c0_30], %63 {strides = array<i32>} : memref<8x128xf32, #tpu.memory_space<vmem>>, vector<8x128xf32>,
    return
  }
}

</mosaic_0001>

<bundles_post_ra>
// kernel: tpu_custom_call.1
= control target key start
LH: loop header
LB: loop body
LE: loop exit
PB: predicated region body
PF: predicated region fallthrough
CT: control target
= control target key end

     0   :  { %10 = vsyncpa [#allocation3], 0  ;;  %s946_s0 = inlined_call_operand.hbm [shape: f32[8,128], index: 0, kind: input, shape index: {}]   ;;  %s947_s1 = inlined_call_operand.hbm [shape: f32[128,128], index: 1, kind: input, shape index: {}]   ;;  %s948_s2 = inlined_call_operand.hbm [shape: f32[128,128], index: 2, kind: input, shape index: {}]   ;;  %s949_s3 = inlined_call_operand.hbm [shape: f32[128,128], index: 3, kind: input, shape index: {}]   ;;  %s950_s4 = inlined_call_operand.vmem [shape: f32[8,128], index: 4, kind: input, shape index: {}]   ;;  %s951_s5 = inlined_call_operand.hbm [shape: f32[8,128], index: 5, kind: output, shape index: {}]  }
   0x1   :  { %11 = vsyncpa [#allocation6], 0 }
   0x2   :  { %12 = vsyncpa [#allocation9], 0 }
   0x3   :  { %13 = vsyncpa [#allocation4], 0  ;;  %s789_s18 = smov [#allocation5]   ;;  %s671_s22 = scalar_lea.hbm %s947_s1, 2048 }
   0x4   :  { %s29_s19 = sshll.u32 %s789_s18, 4  ;;  %p672_p0 = scmp.ne.s32.totalorder %s947_s1, %s671_s22  ;;  %s30_s19 = int_to_ptr.vmem [resolvable:$true] %s29_s19 }
   0x5   :  { %p675_p1 = scmp.lt.u32.totalorder %s671_s22, %s947_s1 }
   0x7   :  { %p677_p2 = pnand %p675_p1, %p672_p0 }
   0x9   :  { %680 = shalt.err (!%p677_p2)
}
   0xa   :  { %s681_s27 = scalar_lea.vmem %s30_s19, 2048  ;;  %p686_p4 = scmp.lt.s32.totalorder %s30_s19, %s30_s19 }
   0xb   :  { %p682_p3 = scmp.ne.s32.totalorder %s30_s19, %s681_s27  ;;  %p687_p5 = scmp.lt.s32.totalorder %s681_s27, %s681_s27 }
   0xd   :  { %p688_p6 = por %p687_p5, %p686_p4 }
   0xf   :  { %p689_p7 = pnand %p688_p6, %p682_p3 }
  0x11   :  { %692 = shalt.err (!%p689_p7)
}
  0x12   :  { %s790_s28 = smov 128   ;;  %s791_s29 = smov 8  }
  0x13   :  { %35 = dma.hbm_to_vmem [thread:$0]  %s947_s1, 2048, %s30_s19, [#allocation6], %s790_s28, %s790_s28, %s791_s29  }
  0x14   :  { %s792_s7 = smov [#allocation2]   ;;  %s793_s9 = smov [#allocation7]  }
  0x15   :  { %s20_s8 = sshll.u32 %s792_s7, 4  ;;  %s41_s10 = sshll.u32 %s793_s9, 4  ;;  %s21_s8 = int_to_ptr.vmem [resolvable:$true] %s20_s8  ;;  %s42_s10 = int_to_ptr.vmem [resolvable:$true] %s41_s10 }
  0x16   :  { %s693_s13 = scalar_lea.hbm %s946_s0, 128 }
  0x17   :  { %p694_p8 = scmp.ne.s32.totalorder %s946_s0, %s693_s13  ;;  %p697_p9 = scmp.lt.u32.totalorder %s693_s13, %s946_s0 }
  0x19   :  { %p699_p10 = pnand %p697_p9, %p694_p8 }
  0x1b   :  { %702 = shalt.err (!%p699_p10)
}
  0x1c   :  { %s703_s1 = scalar_lea.vmem %s21_s8, 128  ;;  %p708_p12 = scmp.lt.s32.totalorder %s21_s8, %s21_s8 }
  0x1d   :  { %p704_p11 = scmp.ne.s32.totalorder %s21_s8, %s703_s1  ;;  %p709_p13 = scmp.lt.s32.totalorder %s703_s1, %s703_s1 }
  0x1f   :  { %p710_p0 = por %p709_p13, %p708_p12 }
  0x21   :  { %p711_p1 = pnand %p710_p0, %p704_p11 }
  0x23   :  { %714 = shalt.err (!%p711_p1)
}
  0x24   :  { %23 = dma.hbm_to_vmem [thread:$0]  %s946_s0, 128, %s21_s8, [#allocation3]  }
  0x25   :  { %s715_s22 = scalar_lea.hbm %s948_s2, 2048 }
  0x26   :  { %p716_p2 = scmp.ne.s32.totalorder %s948_s2, %s715_s22  ;;  %p719_p3 = scmp.lt.u32.totalorder %s715_s22, %s948_s2 }
  0x28   :  { %p721_p4 = pnand %p719_p3, %p716_p2 }
  0x2a   :  { %724 = shalt.err (!%p721_p4)
}
  0x2b   :  { %s725_s27 = scalar_lea.vmem %s42_s10, 2048  ;;  %p730_p6 = scmp.lt.s32.totalorder %s42_s10, %s42_s10 }
  0x2c   :  { %p726_p5 = scmp.ne.s32.totalorder %s42_s10, %s725_s27  ;;  %p731_p7 = scmp.lt.s32.totalorder %s725_s27, %s725_s27 }
  0x2e   :  { %p732_p8 = por %p731_p7, %p730_p6 }
  0x30   :  { %p733_p9 = pnand %p732_p8, %p726_p5 }
  0x32   :  { %736 = shalt.err (!%p733_p9)
}
  0x33   :  { %47 = dma.hbm_to_vmem [thread:$0]  %s948_s2, 2048, %s42_s10, [#allocation6], %s790_s28, %s790_s28, %s791_s29  }
  0x34   :  { %s794_s6 = smov [#allocation8]   ;;  %s737_s11 = scalar_lea.hbm %s949_s3, 2048 }
  0x35   :  { %s53_s7 = sshll.u32 %s794_s6, 4  ;;  %p738_p10 = scmp.ne.s32.totalorder %s949_s3, %s737_s11  ;;  %s54_s7 = int_to_ptr.vmem [resolvable:$true] %s53_s7 }
  0x36   :  { %p741_p11 = scmp.lt.u32.totalorder %s737_s11, %s949_s3 }
  0x38   :  { %p743_p12 = pnand %p741_p11, %p738_p10 }
  0x3a   :  { %746 = shalt.err (!%p743_p12)
}
  0x3b   :  { %s747_s16 = scalar_lea.vmem %s54_s7, 2048  ;;  %p752_p0 = scmp.lt.s32.totalorder %s54_s7, %s54_s7 }
  0x3c   :  { %p748_p13 = scmp.ne.s32.totalorder %s54_s7, %s747_s16  ;;  %p753_p1 = scmp.lt.s32.totalorder %s747_s16, %s747_s16 }
  0x3e   :  { %p754_p2 = por %p753_p1, %p752_p0 }
  0x40   :  { %p755_p3 = pnand %p754_p2, %p748_p13 }
  0x42   :  { %758 = shalt.err (!%p755_p3)
}
  0x43   :  { %59 = dma.hbm_to_vmem [thread:$0]  %s949_s3, 2048, %s54_s7, [#allocation9], %s790_s28, %s790_s28, %s791_s29  }
  0x44   :  { %781 = dma.done.wait [#allocation3], 128  }
  0x45   :  { %782 = vsyncadd [#allocation3], 4294967168 }
  0x46   :  { %783 = dma.done.wait [#allocation6], 4096  }
  0x47   :  { %784 = vsyncadd [#allocation6], 4294963200 }
  0x48   :  { %785 = dma.done.wait [#allocation9], 2048  }
  0x49   :  { %786 = vsyncadd [#allocation9], 4294965248  ;;  %v795_v0 = vmov 0.0|0.0   ;;  %vm796_vm0 = vmmov 0   ;;  %v797_v1 = vmov 0.0   ;;  %v80_v2 = vld [vmem:[#allocation5] sm:$0xff] }
  0x4a   :  { %585 = vmatprep.subr.bf16.mxu0 %v795_v0  ;;  %512 = vmatprep.mubr.msk.f32.mxu0 %vm796_vm0, %v797_v1  ;;  %v81_v3 = vld [vmem:[#allocation5 + $0x8] sm:$0xff]  ;;  %v82_v4 = vld [vmem:[#allocation5 + $0x10] sm:$0xff]  ;;  %v83_v6 = vld [vmem:[#allocation5 + $0x18] sm:$0xff]  ;;  %s798_s23 = smov [#allocation10]  }
  0x4b   :  { %609 = vmatprep.subr.bf16.mxu1 %v795_v0  ;;  %547 = vmatprep.mubr.msk.f32.mxu1 %vm796_vm0, %v797_v1  ;;  %v586_v5 = vpack.c.bf16 %v81_v3, %v80_v2  ;;  %v589_v7 = vpack.c.bf16 %v83_v6, %v82_v4  ;;  %v84_v8 = vld [vmem:[#allocation5 + $0x20] sm:$0xff]  ;;  %v85_v9 = vld [vmem:[#allocation5 + $0x28] sm:$0xff]  ;;  %v86_v11 = vld [vmem:[#allocation5 + $0x30] sm:$0xff]  ;;  %s417_s24 = sshll.u32 %s798_s23, 4  ;;  %s418_s24 = int_to_ptr.vmem [resolvable:$true] %s417_s24 }
  0x4c   :  { %v592_v10 = vpack.c.bf16 %v85_v9, %v84_v8  ;;  %v87_v12 = vld [vmem:[#allocation5 + $0x38] sm:$0xff]  ;;  %v88_v14 = vld [vmem:[#allocation5 + $0x40] sm:$0xff]  ;;  %v89_v15 = vld [vmem:[#allocation5 + $0x48] sm:$0xff]  ;;  %v189_v9 = vlaneseq  ;;  %s759_s25 = scalar_lea.vmem %s418_s24, 128  ;;  %p764_p5 = scmp.lt.s32.totalorder %s418_s24, %s418_s24 }
  0x4d   :  { %587 = vmatpush3.bf16.msra.mxu0 %v586_v5  ;;  %v595_v13 = vpack.c.bf16 %v87_v12, %v86_v11  ;;  %v598_v16 = vpack.c.bf16 %v89_v15, %v88_v14  ;;  %v90_v17 = vld [vmem:[#allocation5 + $0x50] sm:$0xff]  ;;  %v91_v18 = vld [vmem:[#allocation5 + $0x58] sm:$0xff]  ;;  %v92_v20 = vld [vmem:[#allocation5 + $0x60] sm:$0xff]  ;;  %p760_p4 = scmp.ne.s32.totalorder %s418_s24, %s759_s25  ;;  %p765_p6 = scmp.lt.s32.totalorder %s759_s25, %s759_s25 }
  0x4e   :  { %588 = vmatprep.subr.bf16.mxu0 %v795_v0  ;;  %v601_v19 = vpack.c.bf16 %v91_v18, %v90_v17  ;;  %v93_v21 = vld [vmem:[#allocation5 + $0x68] sm:$0xff]  ;;  %v94_v23 = vld [vmem:[#allocation5 + $0x70] sm:$0xff]  ;;  %v95_v24 = vld [vmem:[#allocation5 + $0x78] sm:$0xff] }
  0x4f   :  { %v604_v22 = vpack.c.bf16 %v93_v21, %v92_v20  ;;  %v607_v25 = vpack.c.bf16 %v95_v24, %v94_v23  ;;  %v79_v26 = vld [vmem:[#allocation2] sm:$0xff]  ;;  %v200_v27 = vld [vmem:[#allocation7] sm:$0xff]  ;;  %v201_v28 = vld [vmem:[#allocation7 + $0x8] sm:$0xff]  ;;  %p766_p7 = por %p765_p6, %p764_p5 }
  0x50   :  { %v610_v29 = vpack.c.bf16 %v201_v28, %v200_v27  ;;  %v202_v30 = vld [vmem:[#allocation7 + $0x10] sm:$0xff]  ;;  %v203_v31 = vld [vmem:[#allocation7 + $0x18] sm:$0xff]  ;;  %v204_v33 = vld [vmem:[#allocation7 + $0x20] sm:$0xff] }
  0x51   :  { %590 = vmatpush3.bf16.msra.mxu0 %v589_v7  ;;  %v613_v32 = vpack.c.bf16 %v203_v31, %v202_v30  ;;  %v205_v34 = vld [vmem:[#allocation7 + $0x28] sm:$0xff]  ;;  %v206_v36 = vld [vmem:[#allocation7 + $0x30] sm:$0xff]  ;;  %v207_v37 = vld [vmem:[#allocation7 + $0x38] sm:$0xff]  ;;  %p767_p8 = pnand %p766_p7, %p760_p4 }
  0x52   :  { %591 = vmatprep.subr.bf16.mxu0 %v795_v0  ;;  %611 = vmatpush3.bf16.msra.mxu1 %v610_v29  ;;  %v616_v35 = vpack.c.bf16 %v205_v34, %v204_v33  ;;  %v619_v38 = vpack.c.bf16 %v207_v37, %v206_v36  ;;  %v208_v39 = vld [vmem:[#allocation7 + $0x40] sm:$0xff]  ;;  %v209_v40 = vld [vmem:[#allocation7 + $0x48] sm:$0xff]  ;;  %v210_v42 = vld [vmem:[#allocation7 + $0x50] sm:$0xff] }
  0x53   :  { %612 = vmatprep.subr.bf16.mxu1 %v795_v0  ;;  %v622_v41 = vpack.c.bf16 %v209_v40, %v208_v39  ;;  %v211_v43 = vld [vmem:[#allocation7 + $0x58] sm:$0xff]  ;;  %v212_v45 = vld [vmem:[#allocation7 + $0x60] sm:$0xff]  ;;  %v213_v46 = vld [vmem:[#allocation7 + $0x68] sm:$0xff] }
  0x54   :  { %v625_v44 = vpack.c.bf16 %v211_v43, %v210_v42  ;;  %v628_v47 = vpack.c.bf16 %v213_v46, %v212_v45  ;;  %v214_v48 = vld [vmem:[#allocation7 + $0x70] sm:$0xff]  ;;  %v215_v49 = vld [vmem:[#allocation7 + $0x78] sm:$0xff]  ;;  %v320_v23 = vld [vmem:[#allocation8] sm:$0xff] }
  0x55   :  { %593 = vmatpush3.bf16.msra.mxu0 %v592_v10  ;;  %v631_v50 = vpack.c.bf16 %v215_v49, %v214_v48  ;;  %v190_v10 = vshrl.u32 %v189_v9, 7  ;;  %v74_v11 = vld [vmem:[%s950_s4] sm:$0x1]  ;;  %v75_v15 = vld [vmem:[%s950_s4 + $0x1] sm:$0x1]  ;;  %v321_v24 = vld [vmem:[#allocation8 + $0x8] sm:$0xff] }
  0x56   :  { %594 = vmatprep.subr.bf16.mxu0 %v795_v0  ;;  %614 = vmatpush3.bf16.msra.mxu1 %v613_v32  ;;  %v323_v27 = vld [vmem:[#allocation8 + $0x18] sm:$0xff]  ;;  %v324_v29 = vld [vmem:[#allocation8 + $0x20] sm:$0xff]  ;;  %v325_v30 = vld [vmem:[#allocation8 + $0x28] sm:$0xff] }
  0x57   :  { %615 = vmatprep.subr.bf16.mxu1 %v795_v0  ;;  %v909_v12 = vsub.s32 0, %v190_v10  ;;  %v640_v31 = vpack.c.bf16 %v325_v30, %v324_v29  ;;  %v326_v32 = vld [vmem:[#allocation8 + $0x30] sm:$0xff]  ;;  %v327_v33 = vld [vmem:[#allocation8 + $0x38] sm:$0xff]  ;;  %v329_v36 = vld [vmem:[#allocation8 + $0x48] sm:$0xff] }
  0x58   :  { %v643_v34 = vpack.c.bf16 %v327_v33, %v326_v32  ;;  %v331_v39 = vld [vmem:[#allocation8 + $0x58] sm:$0xff]  ;;  %v333_v42 = vld [vmem:[#allocation8 + $0x68] sm:$0xff] }
  0x59   :  { %596 = vmatpush3.bf16.msra.mxu0 %v595_v13  ;;  %v335_v45 = vld [vmem:[#allocation8 + $0x78] sm:$0xff] }
  0x5a   :  { %597 = vmatprep.subr.bf16.mxu0 %v795_v0  ;;  %617 = vmatpush3.bf16.msra.mxu1 %v616_v35  ;;  %v328_v35 = vld [vmem:[#allocation8 + $0x40] sm:$0xff] }
  0x5b   :  { %618 = vmatprep.subr.bf16.mxu1 %v795_v0  ;;  %v646_v37 = vpack.c.bf16 %v329_v36, %v328_v35 }
  0x5d   :  { %599 = vmatpush3.bf16.msra.mxu0 %v598_v16 }
  0x5e   :  { %600 = vmatprep.subr.bf16.mxu0 %v795_v0  ;;  %620 = vmatpush3.bf16.msra.mxu1 %v619_v38  ;;  %v330_v38 = vld [vmem:[#allocation8 + $0x50] sm:$0xff] }
  0x5f   :  { %621 = vmatprep.subr.bf16.mxu1 %v795_v0  ;;  %v649_v40 = vpack.c.bf16 %v331_v39, %v330_v38 }
  0x61   :  { %602 = vmatpush3.bf16.msra.mxu0 %v601_v19 }
  0x62   :  { %603 = vmatprep.subr.bf16.mxu0 %v795_v0  ;;  %623 = vmatpush3.bf16.msra.mxu1 %v622_v41  ;;  %v332_v41 = vld [vmem:[#allocation8 + $0x60] sm:$0xff] }
  0x63   :  { %624 = vmatprep.subr.bf16.mxu1 %v795_v0  ;;  %v652_v43 = vpack.c.bf16 %v333_v42, %v332_v41 }
  0x65   :  { %605 = vmatpush3.bf16.msra.mxu0 %v604_v22 }
  0x66   :  { %606 = vmatprep.subr.bf16.mxu0 %v795_v0  ;;  %626 = vmatpush3.bf16.msra.mxu1 %v625_v44  ;;  %v334_v44 = vld [vmem:[#allocation8 + $0x70] sm:$0xff] }
  0x67   :  { %627 = vmatprep.subr.bf16.mxu1 %v795_v0  ;;  %v655_v46 = vpack.c.bf16 %v335_v45, %v334_v44 }
  0x69   :  { %608 = vmatpush3.bf16.msra.mxu0 %v607_v25  ;;  %v634_v25 = vpack.c.bf16 %v321_v24, %v320_v23 }
  0x6a   :  { %633 = vmatprep.subr.bf16.mxu0 %v795_v0  ;;  %629 = vmatpush3.bf16.msra.mxu1 %v628_v47 }
  0x6b   :  { %630 = vmatprep.subr.bf16.mxu1 %v795_v0 }
  0x6c   :  { %513 = vmatmul.mubr.f32.vlgmr.msra.gmra.mrb[0].mxu0 %v79_v26  ;;  %v322_v26 = vld [vmem:[#allocation8 + $0x10] sm:$0xff] }
  0x6d   :  { %582 = vmatprep.mubr.msk.f32.mxu0 %vm796_vm0, %v797_v1  ;;  %635 = vmatpush3.bf16.msra.mxu0 %v634_v25  ;;  %v637_v28 = vpack.c.bf16 %v323_v27, %v322_v26 }
  0x6e   :  { %632 = vmatpush3.bf16.msra.mxu1 %v631_v50  ;;  %636 = vmatprep.subr.bf16.mxu0 %v795_v0 }
  0x71   :  { %638 = vmatpush3.bf16.msra.mxu0 %v637_v28 }
  0x72   :  { %639 = vmatprep.subr.bf16.mxu0 %v795_v0 }
  0x75   :  { %641 = vmatpush3.bf16.msra.mxu0 %v640_v31 }
  0x76   :  { %642 = vmatprep.subr.bf16.mxu0 %v795_v0 }
  0x79   :  { %644 = vmatpush3.bf16.msra.mxu0 %v643_v34 }
  0x7a   :  { %645 = vmatprep.subr.bf16.mxu0 %v795_v0 }
  0x7d   :  { %647 = vmatpush3.bf16.msra.mxu0 %v646_v37 }
  0x7e   :  { %648 = vmatprep.subr.bf16.mxu0 %v795_v0 }
  0x81   :  { %650 = vmatpush3.bf16.msra.mxu0 %v649_v40 }
  0x82   :  { %651 = vmatprep.subr.bf16.mxu0 %v795_v0 }
  0x85   :  { %653 = vmatpush3.bf16.msra.mxu0 %v652_v43 }
  0x86   :  { %654 = vmatprep.subr.bf16.mxu0 %v795_v0 }
  0x89   :  { %656 = vmatpush3.bf16.msra.mxu0 %v655_v46 }
 0x13f   :  { %v162_v51 = vpop.f32.mrb[0].mxu0 }
 0x140   :  { %v166_v52 = vrot.slane %v162_v51, 4  ;;  %v173_v53 = vmul.f32 %v162_v51, %v162_v51  ;;  %v514_v54 = vpop.f32.mrb[1].mxu0 }
 0x142   :  { %v167_v55 = vadd.f32 %v166_v52, %v162_v51  ;;  %v174_v56 = vrot.slane %v173_v53, 4 }
 0x144   :  { %v168_v57 = vrot.slane %v167_v55, 2  ;;  %v175_v58 = vadd.f32 %v174_v56, %v173_v53 }
 0x146   :  { %v169_v59 = vadd.f32 %v168_v57, %v167_v55  ;;  %v176_v60 = vrot.slane %v175_v58, 2 }
 0x148   :  { %v170_v61 = vrot.slane %v169_v59, 1  ;;  %v177_v62 = vadd.f32 %v176_v60, %v175_v58 }
 0x14a   :  { %v171_v63 = vadd.f32 %v170_v61, %v169_v59  ;;  %v178_v1 = vrot.slane %v177_v62, 1 }
 0x14c   :  { %v172_v2 = vmul.f32 0.125, %v171_v63  ;;  %v179_v3 = vadd.f32 %v178_v1, %v177_v62 }
 0x14e   :  { %v180_v4 = vmul.f32 0.125, %v179_v3  ;;  %v181_v5 = vmul.f32 %v172_v2, %v172_v2 }
 0x150   :  { %v182_v6 = vsub.f32 %v180_v4, %v181_v5  ;;  %v76_v4 = vld [vmem:[%s950_s4 + $0x2] sm:$0x1] }
 0x152   :  { %v183_v7 = vmax.f32 %v182_v6, 0.0 }
 0x154   :  { %v184_v8 = vadd.f32 1e-05, %v183_v7  ;;  %v77_v7 = vld [vmem:[%s950_s4 + $0x3] sm:$0x1] }
 0x156   :  { %667 = vrsqrt.f32 %v184_v8 }
 0x160   :  { %v668_v13 = vpop.eup %667 }
 0x161   :  { %v186_v14 = vmul.f32 %v668_v13, %v74_v11 }
 0x163   :  { %v192_v16 = vrot.slane %v186_v14, %v909_v12  ;;  %v187_v17 = vmul.f32 %v186_v14, %v172_v2 }
 0x165   :  { %v188_v18 = vsub.f32 %v75_v15, %v187_v17  ;;  %v193_v19 = vmul.f32 %v192_v16, %v162_v51  ;;  %v428_v16 = vld [vmem:[%s950_s4 + $0x4] ss:$0 sm:$0xff] }
 0x167   :  { %v197_v20 = vrot.slane %v188_v18, %v909_v12 }
 0x169   :  { %v198_v21 = vadd.f32 %v197_v20, %v193_v19 }
 0x16b   :  { %v199_v22 = vmax.f32 %v198_v21, 0.0 }
 0x16d   :  { %548 = vmatmul.mubr.f32.vlgmr.msra.gmra.mrb[0].mxu1 %v199_v22 }
 0x240   :  { %v282_v47 = vpop.f32.mrb[0].mxu1 }
 0x241   :  { %v286_v48 = vrot.slane %v282_v47, 4  ;;  %v293_v49 = vmul.f32 %v282_v47, %v282_v47  ;;  %v549_v50 = vpop.f32.mrb[1].mxu1 }
 0x243   :  { %v287_v51 = vadd.f32 %v286_v48, %v282_v47  ;;  %v294_v52 = vrot.slane %v293_v49, 4 }
 0x245   :  { %v288_v53 = vrot.slane %v287_v51, 2  ;;  %v295_v54 = vadd.f32 %v294_v52, %v293_v49 }
 0x247   :  { %v289_v55 = vadd.f32 %v288_v53, %v287_v51  ;;  %v296_v56 = vrot.slane %v295_v54, 2 }
 0x249   :  { %v290_v57 = vrot.slane %v289_v55, 1  ;;  %v297_v58 = vadd.f32 %v296_v56, %v295_v54 }
 0x24b   :  { %v291_v59 = vadd.f32 %v290_v57, %v289_v55  ;;  %v298_v60 = vrot.slane %v297_v58, 1 }
 0x24d   :  { %v292_v61 = vmul.f32 0.125, %v291_v59  ;;  %v299_v0 = vadd.f32 %v298_v60, %v297_v58 }
 0x24f   :  { %v300_v62 = vmul.f32 0.125, %v299_v0  ;;  %v301_v63 = vmul.f32 %v292_v61, %v292_v61 }
 0x251   :  { %v302_v1 = vsub.f32 %v300_v62, %v301_v63 }
 0x253   :  { %v303_v2 = vmax.f32 %v302_v1, 0.0 }
 0x255   :  { %v304_v3 = vadd.f32 1e-05, %v303_v2 }
 0x257   :  { %669 = vrsqrt.f32 %v304_v3 }
 0x261   :  { %v670_v5 = vpop.eup %669 }
 0x262   :  { %v306_v6 = vmul.f32 %v670_v5, %v76_v4 }
 0x264   :  { %v307_v8 = vmul.f32 %v306_v6, %v292_v61  ;;  %v312_v9 = vrot.slane %v306_v6, %v909_v12 }
 0x266   :  { %v308_v10 = vsub.f32 %v77_v7, %v307_v8  ;;  %v313_v11 = vmul.f32 %v312_v9, %v282_v47 }
 0x268   :  { %v317_v13 = vrot.slane %v308_v10, %v909_v12 }
 0x26a   :  { %v318_v14 = vadd.f32 %v317_v13, %v313_v11 }
 0x26c   :  { %v319_v15 = vmax.f32 %v318_v14, 0.0 }
 0x26e   :  { %583 = vmatmul.mubr.f32.vlgmr.msra.gmra.mrb[2].mxu0 %v319_v15 }
 0x341   :  { %v406_v17 = vpop.f32.mrb[2].mxu0 }
 0x342   :  { %v407_v18 = vadd.f32 %v428_v16, %v406_v17  ;;  %v584_v19 = vpop.f32.mrb[3].mxu0 }
 0x344   :  { %410 = vst [vmem:[#allocation10] sm:$0xff] %v407_v18 }
 0x345   :  { %770 = shalt.err (!%p767_p8)
}
 0x346   :  { %s771_s0 = scalar_lea.hbm %s951_s5, 128 }
 0x347   :  { %p772_p9 = scmp.ne.s32.totalorder %s951_s5, %s771_s0  ;;  %p775_p10 = scmp.lt.u32.totalorder %s771_s0, %s951_s5 }
 0x349   :  { %p777_p11 = pnand %p775_p10, %p772_p9 }
 0x34b   :  { %780 = shalt.err (!%p777_p11)
}
 0x34c   :  { %420 = dma.vmem_to_hbm [thread:$0]  %s418_s24, 128, %s951_s5, [#allocation4]  }
 0x34d   :  { %787 = dma.done.wait [#allocation4], 128  }
 0x34e   :  { %788 = vsyncadd [#allocation4], 4294967168 }
 0x34f   :  { %424 = vsyncpa [#allocation3], 1 }
 0x350   :  { %425 = vsyncpa [#allocation6], 1 }
 0x351   :  { %426 = vsyncpa [#allocation9], 1 }
 0x352   :  { %427 = vsyncpa [#allocation4], 1 }

</bundles_post_ra>
